<compile_context>
chip_gen: v7x
topology: tpu7x:2x2x1
jax: 0.10.0
libtpu: 0.0.40
codegen_flags: <defaults>
</compile_context>

<pallas_src>
import functools

import jax
import jax.numpy as jnp
from jax import lax
from jax.experimental import pallas as pl
from jax.experimental.pallas import tpu as pltpu


def _round_up(x, m):
    return ((x + m - 1) // m) * m


def _vmem_capacity_bytes():
    try:
        info = pltpu.get_tpu_info()
        cap = getattr(info, "vmem_capacity_bytes", None)
        if cap:
            return int(cap)
    except Exception:
        pass
    return 64 << 20  # conservative fallback: v7x per-TensorCore VMEM


def _focal_loss_kernel(logits_ref, targets_ref, alpha_ref, out_ref, *,
                       gamma, label_smoothing, reduction, alpha_mode,
                       alpha_scalar, true_b, tile_b):
    i = pl.program_id(0)
    x = logits_ref[...].astype(jnp.float32)                 # [TB, C]
    TB, C = x.shape
    tgt = targets_ref[...]                                   # [TB, 1] int32

    class_ids = lax.broadcasted_iota(jnp.int32, (TB, C), 1)
    one_hot = class_ids == tgt                                # [TB, C] bool

    ones_c = jnp.ones((C, 1), jnp.float32)
    hi = lax.Precision.HIGHEST

    # Row max stays on the XLU; every other class-axis reduction is a
    # [TB,C]@[C,1] ones-matmul on the (otherwise idle) MXU.
    m = jnp.max(x, axis=1, keepdims=True)                    # [TB, 1]
    sumexp = jnp.dot(jnp.exp(x - m), ones_c,
                     preferred_element_type=jnp.float32, precision=hi)
    lse = m + jnp.log(sumexp)                                 # [TB, 1]
    x_t = jnp.dot(jnp.where(one_hot, x, 0.0), ones_c,
                  preferred_element_type=jnp.float32, precision=hi)
    logp_t = x_t - lse                                        # [TB, 1]

    if label_smoothing > 0.0:
        # ce = -sum(soft * logp), soft = one_hot*(1-ls) + (1-one_hot)*off
        #    = -((1 - ls - off) * logp_t + off * sum(logp)),  sum(logp) = sum(x) - C*lse
        off = label_smoothing / (C - 1)
        sum_x = jnp.dot(x, ones_c,
                        preferred_element_type=jnp.float32, precision=hi)
        sum_logp = sum_x - C * lse
        ce = -((1.0 - label_smoothing - off) * logp_t + off * sum_logp)
    else:
        ce = -logp_t                                          # [TB, 1]

    p = jnp.exp(-ce)
    one_minus_p = jnp.maximum(1.0 - p, 0.0)
    g = float(gamma)
    if g.is_integer() and 0.0 <= g <= 8.0:
        # Integer gamma: repeated VPU multiplies instead of EUP log+exp power().
        mod = jnp.ones_like(one_minus_p)
        for _ in range(int(g)):
            mod = mod * one_minus_p
    else:
        mod = jnp.power(one_minus_p, g)
    focal = mod * ce                                          # [TB, 1]

    if alpha_mode == "scalar":
        focal = alpha_scalar * focal
    elif alpha_mode == "vector":
        # alpha.gather(0, targets) as a one-hot select + ones-matmul (MXU).
        alpha_sel = jnp.where(one_hot, alpha_ref[...], 0.0)   # [TB, C]
        alpha_t = jnp.dot(alpha_sel, ones_c,
                          preferred_element_type=jnp.float32, precision=hi)
        focal = alpha_t * focal

    if reduction in ("mean", "sum"):
        # Mask only the per-row result; padded-row garbage (possibly NaN) in the
        # unselected branch is discarded by jnp.where, never accumulated.
        if (true_b % tile_b) != 0:
            rows = lax.broadcasted_iota(jnp.int32, (TB, 1), 0) + i * tile_b
            focal = jnp.where(rows < true_b, focal, 0.0)
        partial = jnp.sum(focal, axis=0, keepdims=True)       # (1, 1)
        r = lax.broadcasted_iota(jnp.int32, (8, 128), 0)
        c = lax.broadcasted_iota(jnp.int32, (8, 128), 1)
        # Each grid step owns one (8,128) output block; only [0,0] is non-zero,
        # so the wrapper-side jnp.sum over the whole array is the total loss.
        out_ref[...] = jnp.where((r == 0) & (c == 0), partial, 0.0)
    else:  # 'none' — per-sample losses; padded rows of the last block are
        # dropped by Pallas' bounds-masked writeback.
        out_ref[...] = focal


def focal_loss(logits, targets, *, alpha=None, gamma=2.0,
               reduction="mean", label_smoothing=0.0, tile_b=None):
    """Pallas TPU implementation of FocalLoss.forward.

    logits : [B, C] float (any float dtype; upcast to f32 inside the kernel).
    targets: [B] int labels.
    alpha  : None, python scalar, or per-class array of shape [C].
    """
    B, C = logits.shape
    if label_smoothing > 0.0 and C < 2:
        raise ValueError("label_smoothing > 0 requires at least 2 classes")

    itemsize = jnp.dtype(logits.dtype).itemsize
    row_align = 8 * max(1, 4 // max(1, itemsize))   # sublane packing alignment
    padded_c = _round_up(C, 128)                    # lane-padded VMEM footprint
    vmem_cap = _vmem_capacity_bytes()

    if tile_b is None:
        # Budget the lane-padded f32 logits tile at ~1/24 of physical VMEM; the
        # live working set (~10-14 buffers of this size) then stays well under
        # half of VMEM on every TPU generation.  No hard row cap.
        budget = max(1 << 20, vmem_cap // 24)
        tile_b = budget // (padded_c * 4)
    if int(tile_b) >= B:
        tile_b = B                                   # single full block
    else:
        tile_b = max(row_align, (int(tile_b) // row_align) * row_align)
    tile_b = int(tile_b)
    grid_b = pl.cdiv(B, tile_b)

    if alpha is None:
        alpha_mode, alpha_scalar = "none", 1.0
        alpha_vec = jnp.ones((1, C), jnp.float32)            # unused in-kernel
    elif isinstance(alpha, (float, int)):
        alpha_mode, alpha_scalar = "scalar", float(alpha)
        alpha_vec = jnp.ones((1, C), jnp.float32)            # unused in-kernel
    else:
        alpha_mode, alpha_scalar = "vector", 1.0
        alpha_vec = jnp.asarray(alpha, jnp.float32).reshape(1, C)

    tgt = jnp.asarray(targets, jnp.int32).reshape(B, 1)

    reduced = reduction in ("mean", "sum")
    if reduced:
        # Per-tile partial sums, one (8,128) block per grid step -> fully
        # parallel grid (megacore sharding on v7x), finished in the wrapper.
        out_shape = jax.ShapeDtypeStruct((grid_b * 8, 128), jnp.float32)
        out_spec = pl.BlockSpec((8, 128), lambda i: (i, 0))
    else:
        out_shape = jax.ShapeDtypeStruct((B, 1), jnp.float32)
        out_spec = pl.BlockSpec((tile_b, 1), lambda i: (i, 0))
    dims = ("parallel",)

    kern = functools.partial(
        _focal_loss_kernel,
        gamma=float(gamma),
        label_smoothing=float(label_smoothing),
        reduction=reduction,
        alpha_mode=alpha_mode,
        alpha_scalar=alpha_scalar,
        true_b=int(B),
        tile_b=int(tile_b),
    )

    out_bytes = (grid_b * 8 * 128 * 4) if reduced else (B * 4)
    cost = pl.CostEstimate(
        flops=int(12 * B * C),
        transcendentals=int(B * C + 4 * B),
        bytes_accessed=int(B * C * itemsize + B * 4 + C * 4 + out_bytes),
    )

    padded_tile_bytes = tile_b * padded_c * 4
    vmem_limit = int(min(vmem_cap * 5 // 8,
                         max(16 << 20, 14 * padded_tile_bytes)))

    out = pl.pallas_call(
        kern,
        out_shape=out_shape,
        grid=(grid_b,),
        in_specs=[
            pl.BlockSpec((tile_b, C), lambda i: (i, 0)),      # logits (native dtype)
            pl.BlockSpec((tile_b, 1), lambda i: (i, 0)),      # targets
            pl.BlockSpec((1, C), lambda i: (0, 0)),           # alpha (resident)
        ],
        out_specs=out_spec,
        compiler_params=pltpu.CompilerParams(
            dimension_semantics=dims,
            vmem_limit_bytes=vmem_limit),
        cost_estimate=cost,
    )(logits, tgt, alpha_vec)

    if reduced:
        total = jnp.sum(out)
        if reduction == "mean":
            total = total / B
        return total
    return out[:, 0]


def _focal_loss_ref(logits, targets, *, alpha=None, gamma=2.0,
                    reduction="mean", label_smoothing=0.0):
    """Pure-JAX reference mirroring the PyTorch module (for verification)."""
    B, C = logits.shape
    logp = jax.nn.log_softmax(logits.astype(jnp.float32), axis=1)
    one_hot = jax.nn.one_hot(targets, C, dtype=jnp.float32)
    if label_smoothing > 0.0:
        off = label_smoothing / (C - 1)
        soft = one_hot * (1.0 - label_smoothing) + (1.0 - one_hot) * off
        ce = -jnp.sum(soft * logp, axis=1)
    else:
        ce = -jnp.sum(one_hot * logp, axis=1)
    p = jnp.exp(-ce)
    fl = (1.0 - p) ** gamma * ce
    if alpha is not None:
        if isinstance(alpha, (float, int)):
            fl = alpha * fl
        else:
            fl = jnp.asarray(alpha, jnp.float32)[targets] * fl
    if reduction == "mean":
        return fl.mean()
    if reduction == "sum":
        return fl.sum()
    return fl


if __name__ == "__main__":
    key = jax.random.PRNGKey(0)
    k1, k2, k3, k4, k5 = jax.random.split(key, 5)

    B, C = 8, 16
    logits = jax.random.normal(k1, (B, C), jnp.float32)
    targets = jax.random.randint(k2, (B,), 0, C)
    alpha = jax.random.uniform(k3, (C,), jnp.float32, minval=0.25, maxval=1.0)

    # 1) main config: per-class alpha, gamma=2, label smoothing, mean reduction
    loss = focal_loss(logits, targets, alpha=alpha, gamma=2.0,
                      reduction="mean", label_smoothing=0.1)
    jax.block_until_ready(loss)
    ref = _focal_loss_ref(logits, targets, alpha=alpha, gamma=2.0,
                          reduction="mean", label_smoothing=0.1)
    assert jnp.allclose(loss, ref, atol=1e-5, rtol=1e-5), (loss, ref)

    # 2) no smoothing / no alpha / non-integer gamma (power fallback) / sum
    loss2 = focal_loss(logits, targets, alpha=None, gamma=1.5,
                       reduction="sum", label_smoothing=0.0)
    jax.block_until_ready(loss2)
    ref2 = _focal_loss_ref(logits, targets, alpha=None, gamma=1.5,
                           reduction="sum", label_smoothing=0.0)
    assert jnp.allclose(loss2, ref2, atol=1e-5, rtol=1e-5), (loss2, ref2)

    # 3) bf16 logits (passed natively, no wrapper upcast), scalar alpha, 'none'
    logits_bf16 = logits.astype(jnp.bfloat16)
    loss3 = focal_loss(logits_bf16, targets, alpha=0.5, gamma=2.0,
                       reduction="none", label_smoothing=0.0)
    jax.block_until_ready(loss3)
    ref3 = _focal_loss_ref(logits_bf16.astype(jnp.float32), targets, alpha=0.5,
                           gamma=2.0, reduction="none", label_smoothing=0.0)
    assert jnp.allclose(loss3, ref3, atol=2e-5, rtol=1e-5), (loss3, ref3)

    # 4) batch not a multiple of the tile -> exercises tail masking and the
    #    multi-step parallel-partials path (grid of 3, last tile partially padded).
    B2 = 20
    logits2 = jax.random.normal(k4, (B2, C), jnp.float32)
    targets2 = jax.random.randint(k5, (B2,), 0, C)
    loss4 = focal_loss(logits2, targets2, alpha=alpha, gamma=3.0,
                       reduction="mean", label_smoothing=0.05, tile_b=8)
    jax.block_until_ready(loss4)
    ref4 = _focal_loss_ref(logits2, targets2, alpha=alpha, gamma=3.0,
                           reduction="mean", label_smoothing=0.05)
    assert jnp.allclose(loss4, ref4, atol=1e-5, rtol=1e-5), (loss4, ref4)

    print("KERNEL_OK")
</pallas_src>

<mosaic_0001>
module attributes {stable_mosaic.version = 11 : i64} {
  func.func @_focal_loss_kernel(%arg0: i32, %arg1: memref<8x16xf32, #tpu.memory_space<vmem>>, %arg2: memref<8x1xi32, #tpu.memory_space<vmem>>, %arg3: memref<1x16xf32, #tpu.memory_space<vmem>>, %arg4: memref<8x128xf32, #tpu.memory_space<vmem>>) attributes {dimension_semantics = [#tpu.dimension_semantics<parallel>], iteration_bounds = array<i64: 1>, scalar_prefetch = 0 : i64, scratch_operands = 0 : i64, tpu.core_type = #tpu.core_type<tc>, window_params = [{transform_indices = @transform_0, window_bounds = array<i64: 8, 16>}, {transform_indices = @transform_1, window_bounds = array<i64: 8, 1>}, {pipeline_mode = #tpu.pipeline_mode<synchronous>, transform_indices = @transform_2, window_bounds = array<i64: 1, 16>}, {transform_indices = @transform_3, window_bounds = array<i64: 8, 128>}]} {
    %c0 = arith.constant 0 : index
    %c0_0 = arith.constant 0 : index
    %0 = vector.load %arg1[%c0, %c0_0] : memref<8x16xf32, #tpu.memory_space<vmem>>, vector<8x16xf32>
    %c0_1 = arith.constant 0 : index
    %c0_2 = arith.constant 0 : index
    %1 = vector.load %arg2[%c0_1, %c0_2] : memref<8x1xi32, #tpu.memory_space<vmem>>, vector<8x1xi32>
    %2 = tpu.iota {dimensions = array<i32: 1>} : vector<8x16xi32>
    %3 = vector.broadcast %1 : vector<8x1xi32> to vector<8x16xi32>
    %4 = arith.cmpi eq, %2, %3 : vector<8x16xi32>
    %cst = arith.constant 1.000000e+00 : f32
    %5 = vector.broadcast %cst : f32 to vector<16x1xf32>
    %cst_3 = arith.constant dense<0xFF800000> : vector<8xf32>
    %6 = vector.multi_reduction <maximumf>, %0, %cst_3 [1] : vector<8x16xf32> to vector<8xf32>
    %7 = vector.shape_cast %6 : vector<8xf32> to vector<8x1xf32>
    %8 = vector.broadcast %7 : vector<8x1xf32> to vector<8x16xf32>
    %9 = arith.subf %0, %8 : vector<8x16xf32>
    %10 = math.exp %9 : vector<8x16xf32>
    %cst_4 = arith.constant dense<0.000000e+00> : vector<8x1xf32>
    %11 = tpu.matmul %10, %5, %cst_4 {dimension_numbers = #tpu.dot_dimension_numbers<[1], [0], [0], [1], [0, 0, 1, 1], [], []>, precision = #tpu.contract_precision<fp32>} : vector<8x16xf32>, vector<16x1xf32>, vector<8x1xf32> -> vector<8x1xf32>
    %12 = math.log %11 : vector<8x1xf32>
    %13 = arith.addf %7, %12 : vector<8x1xf32>
    %cst_5 = arith.constant 0.000000e+00 : f32
    %14 = vector.broadcast %cst_5 : f32 to vector<8x16xf32>
    %15 = arith.select %4, %0, %14 : vector<8x16xi1>, vector<8x16xf32>
    %cst_6 = arith.constant dense<0.000000e+00> : vector<8x1xf32>
    %16 = tpu.matmul %15, %5, %cst_6 {dimension_numbers = #tpu.dot_dimension_numbers<[1], [0], [0], [1], [0, 0, 1, 1], [], []>, precision = #tpu.contract_precision<fp32>} : vector<8x16xf32>, vector<16x1xf32>, vector<8x1xf32> -> vector<8x1xf32>
    %17 = arith.subf %16, %13 : vector<8x1xf32>
    %cst_7 = arith.constant dense<0.000000e+00> : vector<8x1xf32>
    %18 = tpu.matmul %0, %5, %cst_7 {dimension_numbers = #tpu.dot_dimension_numbers<[1], [0], [0], [1], [0, 0, 1, 1], [], []>, precision = #tpu.contract_precision<fp32>} : vector<8x16xf32>, vector<16x1xf32>, vector<8x1xf32> -> vector<8x1xf32>
    %cst_8 = arith.constant 1.600000e+01 : f32
    %19 = vector.broadcast %cst_8 : f32 to vector<8x1xf32>
    %20 = arith.mulf %19, %13 : vector<8x1xf32>
    %21 = arith.subf %18, %20 : vector<8x1xf32>
    %cst_9 = arith.constant 0.893333315 : f32
    %22 = vector.broadcast %cst_9 : f32 to vector<8x1xf32>
    %23 = arith.mulf %22, %17 : vector<8x1xf32>
    %cst_10 = arith.constant 0.00666666683 : f32
    %24 = vector.broadcast %cst_10 : f32 to vector<8x1xf32>
    %25 = arith.mulf %24, %21 : vector<8x1xf32>
    %26 = arith.addf %23, %25 : vector<8x1xf32>
    %cst_11 = arith.constant 0.000000e+00 : f32
    %27 = vector.broadcast %cst_11 : f32 to vector<8x1xf32>
    %28 = arith.subf %27, %26 : vector<8x1xf32>
    %cst_12 = arith.constant 0.000000e+00 : f32
    %29 = vector.broadcast %cst_12 : f32 to vector<8x1xf32>
    %30 = arith.subf %29, %28 : vector<8x1xf32>
    %31 = math.exp %30 : vector<8x1xf32>
    %cst_13 = arith.constant 1.000000e+00 : f32
    %32 = vector.broadcast %cst_13 : f32 to vector<8x1xf32>
    %33 = arith.subf %32, %31 : vector<8x1xf32>
    %cst_14 = arith.constant 0.000000e+00 : f32
    %34 = vector.broadcast %cst_14 : f32 to vector<8x1xf32>
    %35 = arith.maximumf %33, %34 : vector<8x1xf32>
    %cst_15 = arith.constant 1.000000e+00 : f32
    %36 = vector.broadcast %cst_15 : f32 to vector<8x1xf32>
    %37 = arith.mulf %36, %35 : vector<8x1xf32>
    %38 = arith.mulf %37, %35 : vector<8x1xf32>
    %39 = arith.mulf %38, %28 : vector<8x1xf32>
    %c0_16 = arith.constant 0 : index
    %c0_17 = arith.constant 0 : index
    %40 = vector.load %arg3[%c0_16, %c0_17] : memref<1x16xf32, #tpu.memory_space<vmem>>, vector<1x16xf32>
    %cst_18 = arith.constant 0.000000e+00 : f32
    %41 = vector.shape_cast %40 : vector<1x16xf32> to vector<1x16xf32>
    %42 = vector.broadcast %41 : vector<1x16xf32> to vector<8x16xf32>
    %43 = vector.broadcast %cst_18 : f32 to vector<8x16xf32>
    %44 = arith.select %4, %42, %43 : vector<8x16xi1>, vector<8x16xf32>
    %cst_19 = arith.constant dense<0.000000e+00> : vector<8x1xf32>
    %45 = tpu.matmul %44, %5, %cst_19 {dimension_numbers = #tpu.dot_dimension_numbers<[1], [0], [0], [1], [0, 0, 1, 1], [], []>, precision = #tpu.contract_precision<fp32>} : vector<8x16xf32>, vector<16x1xf32>, vector<8x1xf32> -> vector<8x1xf32>
    %46 = arith.mulf %45, %39 : vector<8x1xf32>
    %cst_20 = arith.constant dense<0.000000e+00> : vector<1xf32>
    %47 = vector.multi_reduction <add>, %46, %cst_20 [0] : vector<8x1xf32> to vector<1xf32>
    %48 = vector.shape_cast %47 : vector<1xf32> to vector<1x1xf32>
    %49 = tpu.iota {dimensions = array<i32: 0>} : vector<8x128xi32>
    %50 = tpu.iota {dimensions = array<i32: 1>} : vector<8x128xi32>
    %c0_i32 = arith.constant 0 : i32
    %51 = vector.broadcast %c0_i32 : i32 to vector<8x128xi32>
    %52 = arith.cmpi eq, %49, %51 : vector<8x128xi32>
    %c0_i32_21 = arith.constant 0 : i32
    %53 = vector.broadcast %c0_i32_21 : i32 to vector<8x128xi32>
    %54 = arith.cmpi eq, %50, %53 : vector<8x128xi32>
    %55 = arith.andi %52, %54 : vector<8x128xi1>
    %cst_22 = arith.constant 0.000000e+00 : f32
    %56 = vector.shape_cast %48 : vector<1x1xf32> to vector<1x1xf32>
    %57 = vector.broadcast %56 : vector<1x1xf32> to vector<8x128xf32>
    %58 = vector.broadcast %cst_22 : f32 to vector<8x128xf32>
    %59 = arith.select %55, %57, %58 : vector<8x128xi1>, vector<8x128xf32>
    %c0_23 = arith.constant 0 : index
    %c0_24 = arith.constant 0 : index
    %60 = vector.load %arg4[%c0_23, %c0_24] : memref<8x128xf32, #tpu.memory_space<vmem>>, vector<8x128xf32>
    tpu.vector_store %arg4[%c0_23, %c0_24], %59 {strides = array<i32>} : memref<8x128xf32, #tpu.memory_space<vmem>>, vector<8x128xf32>,
    return
  }
  func.func @transform_0(%arg0: i32) -> (i32, i32) {
    %c0_i32 = arith.constant 0 : i32
    %c0_i32_0 = arith.constant 0 : i32
    return %arg0, %c0_i32 : i32, i32
  }
  func.func @transform_1(%arg0: i32) -> (i32, i32) {
    %c0_i32 = arith.constant 0 : i32
    %c0_i32_0 = arith.constant 0 : i32
    return %arg0, %c0_i32 : i32, i32
  }
  func.func @transform_2(%arg0: i32) -> (i32, i32) {
    %c0_i32 = arith.constant 0 : i32
    %c0_i32_0 = arith.constant 0 : i32
    %c0_i32_1 = arith.constant 0 : i32
    return %c0_i32, %c0_i32_0 : i32, i32
  }
  func.func @transform_3(%arg0: i32) -> (i32, i32) {
    %c0_i32 = arith.constant 0 : i32
    %c0_i32_0 = arith.constant 0 : i32
    return %arg0, %c0_i32 : i32, i32
  }
}

</mosaic_0001>

<bundles_post_ra>
// kernel: tpu_custom_call.1
= control target key start
LH: loop header
LB: loop body
LE: loop exit
PB: predicated region body
PF: predicated region fallthrough
CT: control target
= control target key end

     0   :  { %vm23_vm0 = vcmask 130048   ;;  %s2328_s0 = inlined_call_operand.vmem [shape: f32[8,16], index: 0, kind: input, shape index: {}]   ;;  %s2329_s1 = inlined_call_operand.vmem [shape: s32[8,1], index: 1, kind: input, shape index: {}]   ;;  %s2330_s2 = inlined_call_operand.vmem [shape: f32[1,16], index: 2, kind: input, shape index: {}]   ;;  %s2331_s3 = inlined_call_operand.hbm [shape: f32[8,128], index: 3, kind: output, shape index: {}]  }
   0x1   :  { %v2171_v0 = vld [vmem:[%s2328_s0] sm:$0xff] }
   0x2   :  { %8 = vsyncpa [#allocation3], 0  ;;  %v24_v1 = vsel %vm23_vm0, %v2171_v0, -inf  ;;  %v2142_v2 = vmov 0   ;;  %v16_v3 = vld [vmem:[%s2329_s1] sm:$0xff]  ;;  %v2143_v4 = vmov 0.0|0.0   ;;  %v17_v9 = vlaneseq }
   0x3   :  { %2110 = vset.pattern.permute.xlu0 %v2142_v2  ;;  %2111 = vset.pattern.permute.xlu1 %v2142_v2  ;;  %vm2144_vm1 = vmmov 0   ;;  %v2145_v5 = vmov 0.0   ;;  %v2146_v6 = vmov 1.0|1.0   ;;  %v1835_v27 = vld [vmem:[%s2330_s2] ss:$0 sm:$0xff] }
   0x4   :  { %25 = vmax.xlane.f32.xlu0 %v24_v1  ;;  %2046 = vmatprep.subr.bf16.mxu1 %v2143_v4  ;;  %v2193_v11 = vand.u32 127, %v17_v9  ;;  %v908_v30 = vsel %vm23_vm0, %v2171_v0, 0  ;;  %vm1801_vm3 = vcmask 7168   ;;  %s2147_s2 = smov [#allocation2]  }
   0x5   :  { %1936 = vmatprep.mubr.msk.f32.mxu1 %vm2144_vm1, %v2145_v5  ;;  %2047 = vmatpush3.bf16.msra.mxu1 %v2146_v6  ;;  %v2243_v32 = vand.u32 4294901760, %v908_v30  ;;  %s1827_s16 = sshll.u32 %s2147_s2, 4  ;;  %s1828_s16 = int_to_ptr.vmem [resolvable:$true] %s1827_s16 }
   0x6   :  { %2040 = vmatprep.subr.bf16.mxu0 %v2143_v4  ;;  %1900 = vmatprep.mubr.msk.f32.mxu0 %vm2144_vm1, %v2145_v5  ;;  %vm1812_vm5 = vcmp.eq.s32.totalorder %v2193_v11, 0  ;;  %s2118_s17 = scalar_lea.vmem %s1828_s16, 128  ;;  %p2123_p1 = scmp.lt.s32.totalorder %s1828_s16, %s1828_s16 }
   0x7   :  { %2041 = vmatpush3.bf16.msra.mxu0 %v2146_v6  ;;  %1939 = vmatprep.subr.mxu1 %v2145_v5  ;;  %v976_v34 = vsub.f32 %v908_v30, %v2243_v32  ;;  %p2119_p0 = scmp.ne.s32.totalorder %s1828_s16, %s2118_s17  ;;  %p2124_p2 = scmp.lt.s32.totalorder %s2118_s17, %s2118_s17 }
   0x8   :  { %1903 = vmatprep.subr.mxu0 %v2145_v5 }
   0x9   :  { %v977_v36 = vand.u32 4294901760, %v976_v34  ;;  %p2125_p3 = por %p2124_p2, %p2123_p1 }
   0xb   :  { %v978_v38 = vsub.f32 %v976_v34, %v977_v36  ;;  %p2126_p4 = pnand %p2125_p3, %p2119_p0 }
   0xd   :  { %v979_v40 = vand.u32 4294901760, %v978_v38 }
  0x1a   :  { %20 = vperm.xlu0 %2110, %v16_v3  }
  0x91   :  { %v2188_v7 = vpop.xlane.xlu0 %25 }
  0x92   :  { %v27_v8 = vsub.f32 %v2171_v0, %v2188_v7 }
  0x94   :  { %v28_v10 = vmul.f32 1.442695, %v27_v8 }
  0x96   :  { %2112 = vpow2.f32 %v28_v10 }
  0x99   :  { %v21_v12 = vpop.permute.xlu0 %20 }
  0x9a   :  { %vm22_vm2 = vcmp.eq.s32.totalorder %v2193_v11, %v21_v12  ;;  %v1810_v12 = vshrl.u32 %v17_v9, 7 }
  0x9b   :  { %v469_v13 = vsel %vm22_vm2, %v2171_v0, 0.0  ;;  %v1363_v28 = vsel %vm22_vm2, %v1835_v27, 0.0 }
  0x9c   :  { %v471_v14 = vsel %vm23_vm0, %v469_v13, 0  ;;  %v1365_v29 = vsel %vm23_vm0, %v1363_v28, 0  ;;  %vm1811_vm4 = vcmp.eq.s32.totalorder %v1810_v12, 0 }
  0x9d   :  { %v538_v15 = vand.u32 4294901760, %v471_v14  ;;  %v2240_v31 = vand.u32 4294901760, %v1365_v29  ;;  %vm1813_vm6 = vmand %vm1811_vm4, %vm1812_vm5 }
  0x9f   :  { %v539_v16 = vsub.f32 %v471_v14, %v538_v15  ;;  %v1433_v33 = vsub.f32 %v1365_v29, %v2240_v31 }
  0xa0   :  { %v2113_v17 = vpop.eup %2112 }
  0xa1   :  { %v540_v18 = vand.u32 4294901760, %v539_v16  ;;  %v31_v19 = vsel %vm23_vm0, %v2113_v17, 0  ;;  %v1434_v35 = vand.u32 4294901760, %v1433_v33 }
  0xa2   :  { %v2201_v20 = vand.u32 4294901760, %v31_v19 }
  0xa3   :  { %v541_v21 = vsub.f32 %v539_v16, %v540_v18  ;;  %v1435_v37 = vsub.f32 %v1433_v33, %v1434_v35 }
  0xa4   :  { %v99_v22 = vsub.f32 %v31_v19, %v2201_v20 }
  0xa5   :  { %v542_v23 = vand.u32 4294901760, %v541_v21  ;;  %v1436_v39 = vand.u32 4294901760, %v1435_v37 }
  0xa6   :  { %v100_v24 = vand.u32 4294901760, %v99_v22 }
  0xa7   :  { %1937 = vmatmul.mubr.f32.vlgmr.msra.gmra.mrb[0].mxu1 %v542_v23 }
  0xa8   :  { %v101_v25 = vsub.f32 %v99_v22, %v100_v24  ;;  %1940 = vmatpush3.msra.mxu1 %v2145_v5  ;;  %1941 = vmatprep.mubr.msk.f32.mxu1 %vm2144_vm1, %v2145_v5 }
  0xa9   :  { %1944 = vmatprep.subr.mxu1 %v2145_v5 }
  0xaa   :  { %v102_v26 = vand.u32 4294901760, %v101_v25 }
  0xac   :  { %1901 = vmatmul.mubr.f32.vlgmr.msra.gmra.mrb[0].mxu0 %v102_v26 }
  0xad   :  { %1904 = vmatpush3.msra.mxu0 %v2145_v5  ;;  %1905 = vmatprep.mubr.msk.f32.mxu0 %vm2144_vm1, %v2145_v5 }
  0xae   :  { %1908 = vmatprep.subr.mxu0 %v2145_v5 }
  0xaf   :  { %1942 = vmatmul.mubr.f32.vlgmr.msra.gmra.mrb[0].mxu1 %v538_v15 }
  0xb0   :  { %1945 = vmatpush3.msra.mxu1 %v2145_v5  ;;  %1946 = vmatprep.mubr.msk.f32.mxu1 %vm2144_vm1, %v2145_v5 }
  0xb1   :  { %2048 = vmatprep.subr.bf16.mxu1 %v2143_v4 }
  0xb4   :  { %1906 = vmatmul.mubr.f32.vlgmr.msra.gmra.mrb[0].mxu0 %v2201_v20 }
  0xb5   :  { %1909 = vmatpush3.msra.mxu0 %v2145_v5  ;;  %1910 = vmatprep.mubr.msk.f32.mxu0 %vm2144_vm1, %v2145_v5 }
  0xb6   :  { %2042 = vmatprep.subr.bf16.mxu0 %v2143_v4 }
  0xb7   :  { %1947 = vmatmul.mubr.f32.vlgmr.msra.gmra.mrb[0].mxu1 %v539_v16 }
  0xb8   :  { %2049 = vmatpush3.bf16.msra.mxu1 %v2146_v6  ;;  %1953 = vmatprep.mubr.msk.f32.mxu1 %vm2144_vm1, %v2145_v5 }
  0xb9   :  { %1956 = vmatprep.subr.mxu1 %v2145_v5 }
  0xbc   :  { %1911 = vmatmul.mubr.f32.vlgmr.msra.gmra.mrb[0].mxu0 %v99_v22 }
  0xbd   :  { %2043 = vmatpush3.bf16.msra.mxu0 %v2146_v6  ;;  %1917 = vmatprep.mubr.msk.f32.mxu0 %vm2144_vm1, %v2145_v5 }
  0xbe   :  { %1920 = vmatprep.subr.mxu0 %v2145_v5 }
  0xbf   :  { %1954 = vmatmul.mubr.f32.vlgmr.msra.gmra.mrb[0].mxu1 %v540_v18 }
  0xc0   :  { %1957 = vmatpush3.msra.mxu1 %v2145_v5  ;;  %1958 = vmatprep.mubr.msk.f32.mxu1 %vm2144_vm1, %v2145_v5 }
  0xc1   :  { %2050 = vmatprep.subr.bf16.mxu1 %v2143_v4 }
  0xc4   :  { %1918 = vmatmul.mubr.f32.vlgmr.msra.gmra.mrb[0].mxu0 %v100_v24 }
  0xc5   :  { %1921 = vmatpush3.msra.mxu0 %v2145_v5  ;;  %1922 = vmatprep.mubr.msk.f32.mxu0 %vm2144_vm1, %v2145_v5 }
  0xc6   :  { %2044 = vmatprep.subr.bf16.mxu0 %v2143_v4 }
  0xc7   :  { %1959 = vmatmul.mubr.f32.vlgmr.msra.gmra.mrb[0].mxu1 %v538_v15 }
  0xc8   :  { %2051 = vmatpush3.bf16.msra.mxu1 %v2146_v6  ;;  %1965 = vmatprep.mubr.msk.f32.mxu1 %vm2144_vm1, %v2145_v5 }
  0xc9   :  { %2058 = vmatprep.subr.bf16.mxu1 %v2143_v4 }
  0xcc   :  { %1923 = vmatmul.mubr.f32.vlgmr.msra.gmra.mrb[0].mxu0 %v2201_v20 }
  0xcd   :  { %2045 = vmatpush3.bf16.msra.mxu0 %v2146_v6  ;;  %1929 = vmatprep.mubr.msk.f32.mxu0 %vm2144_vm1, %v2145_v5 }
  0xce   :  { %2052 = vmatprep.subr.bf16.mxu0 %v2143_v4 }
  0xcf   :  { %1966 = vmatmul.mubr.f32.vlgmr.msra.gmra.mrb[0].mxu1 %v538_v15 }
  0xd0   :  { %2059 = vmatpush3.bf16.msra.mxu1 %v2146_v6  ;;  %2008 = vmatprep.mubr.msk.f32.mxu1 %vm2144_vm1, %v2145_v5 }
  0xd1   :  { %2011 = vmatprep.subr.mxu1 %v2145_v5 }
  0xd3   :  { %2009 = vmatmul.mubr.f32.vlgmr.msra.gmra.mrb[2].mxu1 %v1436_v39 }
  0xd4   :  { %1930 = vmatmul.mubr.f32.vlgmr.msra.gmra.mrb[0].mxu0 %v2201_v20  ;;  %2012 = vmatpush3.msra.mxu1 %v2145_v5 }
  0xd5   :  { %2053 = vmatpush3.bf16.msra.mxu0 %v2146_v6  ;;  %1972 = vmatprep.mubr.msk.f32.mxu0 %vm2144_vm1, %v2145_v5 }
  0xd6   :  { %1975 = vmatprep.subr.mxu0 %v2145_v5  ;;  %2013 = vmatprep.mubr.msk.f32.mxu1 %vm2144_vm1, %v2145_v5 }
  0xd7   :  { %2016 = vmatprep.subr.mxu1 %v2145_v5 }
  0xd8   :  { %1973 = vmatmul.mubr.f32.vlgmr.msra.gmra.mrb[2].mxu0 %v979_v40 }
  0xd9   :  { %1976 = vmatpush3.msra.mxu0 %v2145_v5  ;;  %1977 = vmatprep.mubr.msk.f32.mxu0 %vm2144_vm1, %v2145_v5 }
  0xda   :  { %1980 = vmatprep.subr.mxu0 %v2145_v5 }
  0xdb   :  { %2014 = vmatmul.mubr.f32.vlgmr.msra.gmra.mrb[2].mxu1 %v2240_v31 }
  0xdc   :  { %2017 = vmatpush3.msra.mxu1 %v2145_v5  ;;  %2018 = vmatprep.mubr.msk.f32.mxu1 %vm2144_vm1, %v2145_v5 }
  0xdd   :  { %2060 = vmatprep.subr.bf16.mxu1 %v2143_v4 }
  0xe0   :  { %1978 = vmatmul.mubr.f32.vlgmr.msra.gmra.mrb[2].mxu0 %v2243_v32 }
  0xe1   :  { %1981 = vmatpush3.msra.mxu0 %v2145_v5  ;;  %1982 = vmatprep.mubr.msk.f32.mxu0 %vm2144_vm1, %v2145_v5 }
  0xe2   :  { %2054 = vmatprep.subr.bf16.mxu0 %v2143_v4 }
  0xe3   :  { %2019 = vmatmul.mubr.f32.vlgmr.msra.gmra.mrb[2].mxu1 %v1433_v33 }
  0xe4   :  { %2061 = vmatpush3.bf16.msra.mxu1 %v2146_v6  ;;  %2025 = vmatprep.mubr.msk.f32.mxu1 %vm2144_vm1, %v2145_v5 }
  0xe5   :  { %2028 = vmatprep.subr.mxu1 %v2145_v5 }
  0xe8   :  { %1983 = vmatmul.mubr.f32.vlgmr.msra.gmra.mrb[2].mxu0 %v976_v34 }
  0xe9   :  { %2055 = vmatpush3.bf16.msra.mxu0 %v2146_v6  ;;  %1989 = vmatprep.mubr.msk.f32.mxu0 %vm2144_vm1, %v2145_v5 }
  0xea   :  { %1992 = vmatprep.subr.mxu0 %v2145_v5 }
  0xeb   :  { %2026 = vmatmul.mubr.f32.vlgmr.msra.gmra.mrb[2].mxu1 %v1434_v35 }
  0xec   :  { %2029 = vmatpush3.msra.mxu1 %v2145_v5  ;;  %2030 = vmatprep.mubr.msk.f32.mxu1 %vm2144_vm1, %v2145_v5 }
  0xed   :  { %2062 = vmatprep.subr.bf16.mxu1 %v2143_v4 }
  0xf0   :  { %1990 = vmatmul.mubr.f32.vlgmr.msra.gmra.mrb[2].mxu0 %v977_v36 }
  0xf1   :  { %1993 = vmatpush3.msra.mxu0 %v2145_v5  ;;  %1994 = vmatprep.mubr.msk.f32.mxu0 %vm2144_vm1, %v2145_v5 }
  0xf2   :  { %2056 = vmatprep.subr.bf16.mxu0 %v2143_v4 }
  0xf3   :  { %2031 = vmatmul.mubr.f32.vlgmr.msra.gmra.mrb[2].mxu1 %v2240_v31 }
  0xf4   :  { %2063 = vmatpush3.bf16.msra.mxu1 %v2146_v6  ;;  %2037 = vmatprep.mubr.msk.f32.mxu1 %vm2144_vm1, %v2145_v5 }
  0xf8   :  { %1995 = vmatmul.mubr.f32.vlgmr.msra.gmra.mrb[2].mxu0 %v2243_v32 }
  0xf9   :  { %2057 = vmatpush3.bf16.msra.mxu0 %v2146_v6  ;;  %2001 = vmatprep.mubr.msk.f32.mxu0 %vm2144_vm1, %v2145_v5 }
  0xfb   :  { %2038 = vmatmul.mubr.f32.vlgmr.msra.gmra.mrb[2].mxu1 %v2240_v31 }
 0x100   :  { %2002 = vmatmul.mubr.f32.vlgmr.msra.gmra.mrb[2].mxu0 %v2243_v32 }
 0x1a2   :  { %v902_v41 = vpop.f32.mrb[0].mxu1 }
 0x1a3   :  { %v1967_v42 = vpop.f32.mrb[1].mxu1 }
 0x1a7   :  { %v462_v43 = vpop.f32.mrb[0].mxu0 }
 0x1a8   :  { %2114 = vlog2.f32 %v462_v43  ;;  %v1931_v44 = vpop.f32.mrb[1].mxu0 }
 0x1b2   :  { %v2115_v45 = vpop.eup %2114 }
 0x1b3   :  { %v467_v46 = vmul.f32 0.6931472, %v2115_v45 }
 0x1b5   :  { %v468_v47 = vadd.f32 %v467_v46, %v2188_v7 }
 0x1b7   :  { %v906_v48 = vsub.f32 %v902_v41, %v468_v47  ;;  %v1343_v51 = vmul.f32 16.0, %v468_v47 }
 0x1b9   :  { %v1345_v55 = vmul.f32 0.8933333, %v906_v48 }
 0x1ce   :  { %v1796_v49 = vpop.f32.mrb[2].mxu1 }
 0x1cf   :  { %v2039_v50 = vpop.f32.mrb[3].mxu1 }
 0x1d3   :  { %v1339_v52 = vpop.f32.mrb[2].mxu0 }
 0x1d4   :  { %v1344_v53 = vsub.f32 %v1339_v52, %v1343_v51  ;;  %v2003_v54 = vpop.f32.mrb[3].mxu0 }
 0x1d6   :  { %v1346_v56 = vmul.f32 0.006666667, %v1344_v53 }
 0x1d8   :  { %v1347_v57 = vadd.f32 %v1346_v56, %v1345_v55 }
 0x1da   :  { %v1348_v58 = vsub.f32 0.0, %v1347_v57 }
 0x1dc   :  { %v1349_v59 = vsub.f32 0.0, %v1348_v58 }
 0x1de   :  { %v1350_v60 = vmul.f32 1.442695, %v1349_v59 }
 0x1e0   :  { %2116 = vpow2.f32 %v1350_v60 }
 0x1ea   :  { %v2117_v61 = vpop.eup %2116 }
 0x1eb   :  { %v1352_v62 = vsub.f32 1.0, %v2117_v61 }
 0x1ed   :  { %v1353_v63 = vmax.f32 %v1352_v62, 0.0 }
 0x1ef   :  { %v1354_v0 = vmul.f32 %v1353_v63, %v1353_v63 }
 0x1f1   :  { %v1355_v1 = vmul.f32 %v1354_v0, %v1348_v58 }
 0x1f3   :  { %v1800_v2 = vmul.f32 %v1796_v49, %v1355_v1 }
 0x1f5   :  { %v1802_v3 = vsel %vm1801_vm3, %v1800_v2, 0.0 }
 0x1f6   :  { %v1803_v4 = vrot.slane %v1802_v3, 4 }
 0x1f8   :  { %v1804_v5 = vadd.f32 %v1803_v4, %v1802_v3 }
 0x1fa   :  { %v1805_v6 = vrot.slane %v1804_v5, 2 }
 0x1fc   :  { %v1806_v7 = vadd.f32 %v1805_v6, %v1804_v5 }
 0x1fe   :  { %v1807_v8 = vrot.slane %v1806_v7, 1 }
 0x200   :  { %v1808_v10 = vadd.f32 %v1807_v8, %v1806_v7 }
 0x202   :  { %1816 = vperm.xlu1 %2111, %v1808_v10  }
 0x281   :  { %v1817_v13 = vpop.permute.xlu1 %1816 }
 0x282   :  { %v1819_v14 = vsel %vm1813_vm6, %v1817_v13, 0.0 }
 0x283   :  { %1820 = vst [vmem:[#allocation2] sm:$0xff] %v1819_v14 }
 0x284   :  { %2129 = shalt.err (!%p2126_p4)
}
 0x285   :  { %s2130_s20 = scalar_lea.hbm %s2331_s3, 128 }
 0x286   :  { %p2131_p5 = scmp.ne.s32.totalorder %s2331_s3, %s2130_s20  ;;  %p2134_p6 = scmp.lt.u32.totalorder %s2130_s20, %s2331_s3 }
 0x288   :  { %p2136_p7 = pnand %p2134_p6, %p2131_p5 }
 0x28a   :  { %2139 = shalt.err (!%p2136_p7)
}
 0x28b   :  { %1830 = dma.vmem_to_hbm [thread:$0]  %s1828_s16, 128, %s2331_s3, [#allocation3]  }
 0x28c   :  { %2140 = dma.done.wait [#allocation3], 128  }
 0x28d   :  { %2141 = vsyncadd [#allocation3], 4294967168 }
 0x28e   :  { %1834 = vsyncpa [#allocation3], 1 }

</bundles_post_ra>
